<compile_context>
chip_gen: v5e
topology: v5e:2x2
jax: 0.10.0
libtpu: 0.0.40
codegen_flags: <defaults>
</compile_context>

<pallas_src>
import jax
import jax.numpy as jnp
from jax.experimental import pallas as pl
from jax.experimental.pallas import tpu as pltpu

LANE = 128


def _round_up(v, m):
    return (v + m - 1) // m * m


def mxmnet_kernel(ahat_ref, xw_ref, bstack_ref, wf_ref, bf_ref, poolt_ref,
                  out_ref):
    f32 = jnp.float32
    i = pl.program_id(0)

    @pl.when(i == 0)
    def _init():
        out_ref[...] = jnp.zeros_like(out_ref)

    # One MXU pass does the GCN propagation for BOTH conv branches at once:
    #   h2 = relu( Ahat_slab @ (x @ [Wl | Wg]) + [bl | bg] )   -> [tm, 2H(pad)]
    h2 = jnp.dot(ahat_ref[...], xw_ref[...], preferred_element_type=f32)
    h2 = jnp.maximum(h2 + bstack_ref[...], 0.0)

    # fusion Linear(2H -> H) on the stacked [local | global] activations
    fused = jnp.dot(h2.astype(jnp.bfloat16), wf_ref[...],
                    preferred_element_type=f32)
    fused = jnp.maximum(fused + bf_ref[...], 0.0)

    # Per-graph sum-pool of this row slab, accumulated into the resident
    # output block (pool^T is [tm, Gp]; contract the node axis of both).
    out_ref[...] += jax.lax.dot_general(
        poolt_ref[...], fused.astype(jnp.bfloat16),
        dimension_numbers=(((0,), (0,)), ((), ())),
        preferred_element_type=f32)


def mxmnet_forward(params, x, edge_index, batch, pos, num_graphs, *, tm=256):
    """Builds the GCN-normalized adjacency + packed/padded params (glue),
    then runs the row-tiled fused Pallas kernel; the tiny per-graph MLP head
    runs in plain XLA."""
    del pos  # unused by the reference forward as well
    f32, bf16 = jnp.float32, jnp.bfloat16
    x = x.astype(f32)
    N = x.shape[0]
    H = params["wl"].shape[1]
    G = num_graphs

    H2 = 2 * H
    H2p = _round_up(H2, LANE)     # stacked conv width, lane-padded
    Hp = _round_up(H, LANE)       # fusion width, lane-padded
    Np = _round_up(N, LANE)       # node count padded to lane multiple
    Gp = _round_up(G, LANE)       # graph count, lane-padded (dense pool loads)

    # Row-slab size: power of two, >=16 (bf16 sublane packing), divides Np.
    tm = min(max(tm, 16), Np)
    tm = 1 << (tm.bit_length() - 1)
    while Np % tm:
        tm //= 2

    # ---- graph glue (plain JAX): dense GCN-normalized adjacency -----------
    # TODO(synk): replace the dense N x N adjacency with a CSR/edge-list gather
    #             (scalar prefetch) at large N -- O(E) instead of O(N^2).
    src, dst = edge_index[0], edge_index[1]
    A = jnp.zeros((N, N), f32).at[dst, src].add(1.0)
    A = A + jnp.eye(N, dtype=f32)
    deg = A.sum(axis=1)
    d_inv_sqrt = jnp.where(deg > 0, 1.0 / jnp.sqrt(deg), 0.0)
    ahat = d_inv_sqrt[:, None] * A * d_inv_sqrt[None, :]
    ahat_p = jnp.zeros((Np, Np), bf16).at[:N, :N].set(ahat.astype(bf16))

    # ---- stacked conv weights: xw = x @ [Wl | Wg] (tiny, plain XLA) --------
    wstack = jnp.concatenate([params["wl"], params["wg"]], axis=1)   # [in, 2H]
    xw = x @ wstack                                                  # [N, 2H]
    xw_p = jnp.zeros((Np, H2p), bf16).at[:N, :H2].set(xw.astype(bf16))

    bstack = jnp.concatenate([params["bl"], params["bg"]])           # [2H]
    bstack_p = jnp.zeros((1, H2p), f32).at[0, :H2].set(bstack)

    wf_p = jnp.zeros((H2p, Hp), bf16).at[:H2, :H].set(params["wf"].astype(bf16))
    bf_p = jnp.zeros((1, Hp), f32).at[0, :H].set(params["bf"])

    # Transposed one-hot pooling operator [Np, Gp]; padded node rows and
    # padded graph columns stay zero so they never pollute the per-graph sums.
    poolt = (batch[:, None] == jnp.arange(G)[None, :]).astype(bf16)  # [N, G]
    poolt_p = jnp.zeros((Np, Gp), bf16).at[:N, :G].set(poolt)
    counts = jnp.maximum(poolt.astype(f32).sum(axis=0)[:, None], 1.0)  # [G, 1]

    grid = (Np // tm,)
    vmem_limit = int(
        2 * tm * Np * 2              # double-buffered ahat slabs (bf16)
        + 2 * tm * Gp * 2            # double-buffered pool^T slabs (bf16)
        + Np * H2p * 2               # resident xw (bf16)
        + H2p * Hp * 2               # resident fusion weight (bf16)
        + (H2p + Hp) * 4             # biases
        + Gp * Hp * 4                # resident pooled-sum output (f32)
        + 8 * tm * (H2p + Hp) * 4    # intermediate headroom
    ) + (4 << 20)
    vmem_limit = min(vmem_limit, 64 << 20)

    pooled_sum = pl.pallas_call(
        mxmnet_kernel,
        out_shape=jax.ShapeDtypeStruct((Gp, Hp), f32),
        grid=grid,
        in_specs=[
            pl.BlockSpec((tm, Np), lambda i: (i, 0)),    # ahat row slab (bf16)
            pl.BlockSpec((Np, H2p), lambda i: (0, 0)),   # xw (resident)
            pl.BlockSpec((1, H2p), lambda i: (0, 0)),    # [bl | bg]
            pl.BlockSpec((H2p, Hp), lambda i: (0, 0)),   # fusion weight
            pl.BlockSpec((1, Hp), lambda i: (0, 0)),     # fusion bias
            pl.BlockSpec((tm, Gp), lambda i: (i, 0)),    # pool^T row slab
        ],
        out_specs=pl.BlockSpec((Gp, Hp), lambda i: (0, 0)),
        compiler_params=pltpu.CompilerParams(
            # Row axis is a reduction into the resident output -> "arbitrary".
            # TODO(synk): per-core partial accumulators would allow marking it
            #             "parallel" for v7x's two TensorCores.
            dimension_semantics=("arbitrary",),
            vmem_limit_bytes=vmem_limit,
        ),
    )(ahat_p, xw_p, bstack_p, wf_p, bf_p, poolt_p)

    # Mean-pool normalization + tiny [G, .] MLP head in plain XLA
    # (M=G=2 rows, 1-lane final output: cheaper outside the kernel).
    pooled = pooled_sum[:G, :H] / counts
    h = jnp.maximum(pooled @ params["w1"] + params["b1"], 0.0)
    return h @ params["w2"] + params["b2"]


def init_params(key, in_channels, hidden_channels):
    """Deterministic synthetic parameters matching the module's shapes.
    Weights are stored [in, out]; biases are 1-D."""
    H = hidden_channels
    ks = jax.random.split(key, 10)
    s = 0.1

    def w(k, shape):
        return (s * jax.random.normal(k, shape)).astype(jnp.float32)

    return {
        # GCNConv local / global: Linear(in_channels -> H) + bias
        "wl": w(ks[0], (in_channels, H)), "bl": w(ks[1], (H,)),
        "wg": w(ks[2], (in_channels, H)), "bg": w(ks[3], (H,)),
        # fusion: Linear(2H -> H)
        "wf": w(ks[4], (2 * H, H)), "bf": w(ks[5], (H,)),
        # lin1: Linear(H -> H//2), lin2: Linear(H//2 -> 1)
        "w1": w(ks[6], (H, H // 2)), "b1": w(ks[7], (H // 2,)),
        "w2": w(ks[8], (H // 2, 1)), "b2": jnp.zeros((1,), jnp.float32),
    }


if __name__ == "__main__":
    key = jax.random.PRNGKey(0)
    k_param, k_x, k_edge, k_pos = jax.random.split(key, 4)

    # Small synthetic graph batch: 48 nodes split across 2 graphs.
    N = 48
    in_channels = 4
    hidden_channels = 32
    num_graphs = 2
    num_edges = 96

    x = jax.random.normal(k_x, (N, in_channels), jnp.float32)
    edge_index = jax.random.randint(k_edge, (2, num_edges), 0, N, jnp.int32)
    batch = jnp.concatenate([jnp.zeros(N // 2, jnp.int32),
                             jnp.ones(N - N // 2, jnp.int32)])
    pos = jax.random.normal(k_pos, (N, 3), jnp.float32)  # unused by forward

    params = init_params(k_param, in_channels, hidden_channels)

    # tm=64 -> padded N=128 gives a 2-step grid, exercising the row-slab
    # pipeline and the resident pooled accumulator.
    out = mxmnet_forward(params, x, edge_index, batch, pos, num_graphs, tm=64)
    out = jax.block_until_ready(out)
    assert out.shape == (num_graphs, 1)
    print("KERNEL_OK")
</pallas_src>

<mosaic_0001>
module attributes {stable_mosaic.version = 11 : i64} {
  func.func @mxmnet_kernel(%arg0: i32, %arg1: memref<64x128xbf16, #tpu.memory_space<vmem>>, %arg2: memref<128x128xbf16, #tpu.memory_space<vmem>>, %arg3: memref<1x128xf32, #tpu.memory_space<vmem>>, %arg4: memref<128x128xbf16, #tpu.memory_space<vmem>>, %arg5: memref<1x128xf32, #tpu.memory_space<vmem>>, %arg6: memref<64x128xbf16, #tpu.memory_space<vmem>>, %arg7: memref<128x128xf32, #tpu.memory_space<vmem>>) attributes {dimension_semantics = [#tpu.dimension_semantics<arbitrary>], iteration_bounds = array<i64: 2>, scalar_prefetch = 0 : i64, scratch_operands = 0 : i64, tpu.core_type = #tpu.core_type<tc>, window_params = [{transform_indices = @transform_0, window_bounds = array<i64: 64, 128>}, {pipeline_mode = #tpu.pipeline_mode<synchronous>, transform_indices = @transform_1, window_bounds = array<i64: 128, 128>}, {pipeline_mode = #tpu.pipeline_mode<synchronous>, transform_indices = @transform_2, window_bounds = array<i64: 1, 128>}, {pipeline_mode = #tpu.pipeline_mode<synchronous>, transform_indices = @transform_3, window_bounds = array<i64: 128, 128>}, {pipeline_mode = #tpu.pipeline_mode<synchronous>, transform_indices = @transform_4, window_bounds = array<i64: 1, 128>}, {transform_indices = @transform_5, window_bounds = array<i64: 64, 128>}, {pipeline_mode = #tpu.pipeline_mode<synchronous>, transform_indices = @transform_6, window_bounds = array<i64: 128, 128>}]} {
    %c0_i32 = arith.constant 0 : i32
    %0 = arith.cmpi eq, %arg0, %c0_i32 : i32
    %1 = arith.extui %0 : i1 to i32
    %c0_i32_0 = arith.constant 0 : i32
    %2 = arith.cmpi ne, %1, %c0_i32_0 : i32
    scf.if %2 {
      %cst_20 = arith.constant 0.000000e+00 : f32
      %25 = vector.broadcast %cst_20 : f32 to vector<128x128xf32>
      %c0_21 = arith.constant 0 : index
      %c0_22 = arith.constant 0 : index
      %26 = vector.load %arg7[%c0_21, %c0_22] : memref<128x128xf32, #tpu.memory_space<vmem>>, vector<128x128xf32>
      tpu.vector_store %arg7[%c0_21, %c0_22], %25 {strides = array<i32>} : memref<128x128xf32, #tpu.memory_space<vmem>>, vector<128x128xf32>,
    } else {
    }
    %c0 = arith.constant 0 : index
    %c0_1 = arith.constant 0 : index
    %3 = vector.load %arg1[%c0, %c0_1] : memref<64x128xbf16, #tpu.memory_space<vmem>>, vector<64x128xbf16>
    %c0_2 = arith.constant 0 : index
    %c0_3 = arith.constant 0 : index
    %4 = vector.load %arg2[%c0_2, %c0_3] : memref<128x128xbf16, #tpu.memory_space<vmem>>, vector<128x128xbf16>
    %cst = arith.constant dense<0.000000e+00> : vector<64x128xf32>
    %5 = tpu.matmul %3, %4, %cst {dimension_numbers = #tpu.dot_dimension_numbers<[1], [0], [0], [1], [0, 0, 1, 1], [], []>} : vector<64x128xbf16>, vector<128x128xbf16>, vector<64x128xf32> -> vector<64x128xf32>
    %c0_4 = arith.constant 0 : index
    %c0_5 = arith.constant 0 : index
    %6 = vector.load %arg3[%c0_4, %c0_5] : memref<1x128xf32, #tpu.memory_space<vmem>>, vector<1x128xf32>
    %7 = vector.broadcast %6 : vector<1x128xf32> to vector<64x128xf32>
    %8 = arith.addf %5, %7 : vector<64x128xf32>
    %cst_6 = arith.constant 0.000000e+00 : f32
    %9 = vector.broadcast %cst_6 : f32 to vector<64x128xf32>
    %10 = arith.maximumf %8, %9 : vector<64x128xf32>
    %11 = arith.truncf %10 : vector<64x128xf32> to vector<64x128xbf16>
    %c0_7 = arith.constant 0 : index
    %c0_8 = arith.constant 0 : index
    %12 = vector.load %arg4[%c0_7, %c0_8] : memref<128x128xbf16, #tpu.memory_space<vmem>>, vector<128x128xbf16>
    %cst_9 = arith.constant dense<0.000000e+00> : vector<64x128xf32>
    %13 = tpu.matmul %11, %12, %cst_9 {dimension_numbers = #tpu.dot_dimension_numbers<[1], [0], [0], [1], [0, 0, 1, 1], [], []>} : vector<64x128xbf16>, vector<128x128xbf16>, vector<64x128xf32> -> vector<64x128xf32>
    %c0_10 = arith.constant 0 : index
    %c0_11 = arith.constant 0 : index
    %14 = vector.load %arg5[%c0_10, %c0_11] : memref<1x128xf32, #tpu.memory_space<vmem>>, vector<1x128xf32>
    %15 = vector.broadcast %14 : vector<1x128xf32> to vector<64x128xf32>
    %16 = arith.addf %13, %15 : vector<64x128xf32>
    %cst_12 = arith.constant 0.000000e+00 : f32
    %17 = vector.broadcast %cst_12 : f32 to vector<64x128xf32>
    %18 = arith.maximumf %16, %17 : vector<64x128xf32>
    %c0_13 = arith.constant 0 : index
    %c0_14 = arith.constant 0 : index
    %19 = vector.load %arg7[%c0_13, %c0_14] : memref<128x128xf32, #tpu.memory_space<vmem>>, vector<128x128xf32>
    %c0_15 = arith.constant 0 : index
    %c0_16 = arith.constant 0 : index
    %20 = vector.load %arg6[%c0_15, %c0_16] : memref<64x128xbf16, #tpu.memory_space<vmem>>, vector<64x128xbf16>
    %21 = arith.truncf %18 : vector<64x128xf32> to vector<64x128xbf16>
    %cst_17 = arith.constant dense<0.000000e+00> : vector<128x128xf32>
    %22 = tpu.matmul %20, %21, %cst_17 {dimension_numbers = #tpu.dot_dimension_numbers<[0], [0], [1], [1], [0, 1, 1, 1], [], []>} : vector<64x128xbf16>, vector<64x128xbf16>, vector<128x128xf32> -> vector<128x128xf32>
    %23 = arith.addf %19, %22 : vector<128x128xf32>
    %c0_18 = arith.constant 0 : index
    %c0_19 = arith.constant 0 : index
    %24 = vector.load %arg7[%c0_18, %c0_19] : memref<128x128xf32, #tpu.memory_space<vmem>>, vector<128x128xf32>
    tpu.vector_store %arg7[%c0_18, %c0_19], %23 {strides = array<i32>} : memref<128x128xf32, #tpu.memory_space<vmem>>, vector<128x128xf32>,
    return
  }
  func.func @transform_0(%arg0: i32) -> (i32, i32) {
    %c0_i32 = arith.constant 0 : i32
    %c0_i32_0 = arith.constant 0 : i32
    return %arg0, %c0_i32 : i32, i32
  }
  func.func @transform_1(%arg0: i32) -> (i32, i32) {
    %c0_i32 = arith.constant 0 : i32
    %c0_i32_0 = arith.constant 0 : i32
    %c0_i32_1 = arith.constant 0 : i32
    return %c0_i32, %c0_i32_0 : i32, i32
  }
  func.func @transform_2(%arg0: i32) -> (i32, i32) {
    %c0_i32 = arith.constant 0 : i32
    %c0_i32_0 = arith.constant 0 : i32
    %c0_i32_1 = arith.constant 0 : i32
    return %c0_i32, %c0_i32_0 : i32, i32
  }
  func.func @transform_3(%arg0: i32) -> (i32, i32) {
    %c0_i32 = arith.constant 0 : i32
    %c0_i32_0 = arith.constant 0 : i32
    %c0_i32_1 = arith.constant 0 : i32
    return %c0_i32, %c0_i32_0 : i32, i32
  }
  func.func @transform_4(%arg0: i32) -> (i32, i32) {
    %c0_i32 = arith.constant 0 : i32
    %c0_i32_0 = arith.constant 0 : i32
    %c0_i32_1 = arith.constant 0 : i32
    return %c0_i32, %c0_i32_0 : i32, i32
  }
  func.func @transform_5(%arg0: i32) -> (i32, i32) {
    %c0_i32 = arith.constant 0 : i32
    %c0_i32_0 = arith.constant 0 : i32
    return %arg0, %c0_i32 : i32, i32
  }
  func.func @transform_6(%arg0: i32) -> (i32, i32) {
    %c0_i32 = arith.constant 0 : i32
    %c0_i32_0 = arith.constant 0 : i32
    %c0_i32_1 = arith.constant 0 : i32
    return %c0_i32, %c0_i32_0 : i32, i32
  }
}

</mosaic_0001>

<bundles_post_ra>
// kernel: tpu_custom_call.1
= control target key start
LH: loop header
LB: loop body
LE: loop exit
PB: predicated region body
PF: predicated region fallthrough
CT: control target
= control target key end

     0   :  { %s1523_s0 = inlined_call_operand.hbm [shape: bf16[128,128], index: 0, kind: input, shape index: {}]   ;;  %s1524_s1 = inlined_call_operand.hbm [shape: bf16[128,128], index: 1, kind: input, shape index: {}]   ;;  %s1525_s2 = inlined_call_operand.vmem [shape: f32[1,128], index: 2, kind: input, shape index: {}]   ;;  %s1526_s3 = inlined_call_operand.hbm [shape: bf16[128,128], index: 3, kind: input, shape index: {}]   ;;  %s1527_s4 = inlined_call_operand.vmem [shape: f32[1,128], index: 4, kind: input, shape index: {}]   ;;  %s1528_s5 = inlined_call_operand.hbm [shape: bf16[128,128], index: 5, kind: input, shape index: {}]   ;;  %s1529_s6 = inlined_call_operand.hbm [shape: f32[128,128], index: 6, kind: output, shape index: {}]  }
   0x1   :  { %1531 = sst [smem:[#allocation15_spill]] %s1523_s0 }
   0x2   :  { %11 = vsyncpa [#allocation3], 0 }
   0x3   :  { %13 = vsyncpa [#allocation3 + $0x1], 0 }
   0x4   :  { %14 = vsyncpa [#allocation6], 0 }
   0x5   :  { %15 = vsyncpa [#allocation9], 0 }
   0x6   :  { %17 = vsyncpa [#allocation9 + $0x1], 0 }
   0x7   :  { %18 = vsyncpa [#allocation4], 0  ;;  %s1355_s21 = smov 0   ;;  %s1357_s22 = smov 0  }
   0x8   :  { %s1359_s23 = smov 0   ;;  %s1361_s24 = smov 0  }
   0x9 LB: > { %s1374_s25 = sadd.s32 4294967295, %s1310_s24   ;;  %p44_p0 = scmp.ne.s32.totalorder %s1302_s22, %s1298_s21  ;;  %s1310_s24 = sphi %s1361_s24, %s1540_s24   ;;  %s1306_s23 = sphi %s1359_s23, %s1539_s23   ;;  %s1302_s22 = sphi %s1357_s22, %s1538_s22   ;;  %s1298_s21 = sphi %s1355_s21, %s1537_s21  }
   0xa   : > { %p45_p1 = scmp.eq.s32.totalorder %s1374_s25, 0  ;;  %p882_p2 = scmp.ge.s32.totalorder %s1310_s24, 1 }
   0xb   : > { %p186_p3 = scmp.lt.s32.totalorder %s1310_s24, 3  ;;  %p883_p4 = scmp.ne.s32.totalorder %s1374_s25, 0 }
   0xc   : > { %p1383_p5 = por %p45_p1, %p44_p0  ;;  %s197_s29 = sshll.u32 %s1524_s1, 4  ;;  %s198_s29 = int_to_ptr.hbm [resolvable:$true] %s197_s29 }
   0xd   : > { %p1390_p6 = pnand %p882_p2, %p186_p3  ;;  %s1312_s7 = smov [#allocation5]  }
   0xe   : > { %s199_s8 = sshll.u32 %s1312_s7, 4  ;;  %s214_s11 = sshll.u32 %s1526_s3, 4  ;;  %s200_s8 = int_to_ptr.vmem [resolvable:$true] %s199_s8  ;;  %s215_s11 = int_to_ptr.hbm [resolvable:$true] %s214_s11 }
   0xf   : > { %p1052_p7 = pneg %p1390_p6  ;;  %s1313_s12 = smov 64  }
  0x10   : > { %s1314_s13 = smov 4   ;;  %s1315_s14 = smov [#allocation7]  }
  0x11   : > { %p1053_p8 = pnand %p1052_p7, %p45_p1  ;;  %s216_s15 = sshll.u32 %s1315_s14, 4  ;;  %s217_s15 = int_to_ptr.vmem [resolvable:$true] %s216_s15 }
  0x12   : > { %s1408_s16 = sadd.s32 1, %s1310_s24   ;;  %s31_s17 = sadd.s32 1, %s1306_s23 }
  0x13   : > { %1055 = dma.hbm_to_vmem [thread:$0]  (!%p1053_p8), %s198_s29, 1024, %s200_s8, [#allocation6], %s1313_s12, %s1313_s12, %s1314_s13  }
  0x14   : > { %1058 = dma.hbm_to_vmem [thread:$0]  (!%p1053_p8), %s215_s11, 1024, %s217_s15, [#allocation6], %s1313_s12, %s1313_s12, %s1314_s13  }
  0x15   : > { %s28_s18 = ssub.s32 %s1310_s24, %s1408_s16  ;;  %p38_p9 = scmp.ne.s32.totalorder %s1306_s23, %s1302_s22 }
  0x16   : > { %p29_p10 = scmp.eq.s32.totalorder %s28_s18, 0  ;;  %p39_p11 = scmp.eq.s32.totalorder %s1310_s24, 0 }
  0x17   : > { %p1068_p12 = scmp.lt.s32.totalorder %s1310_s24, 2  ;;  %s1418_s19 = sand.u32 1, %s1306_s23  }
  0x18   : > { %s1421_s20 = scalar_select %p29_p10, %s1306_s23, %s31_s17  }
  0x19   : > { %p40_p13 = por %p39_p11, %p38_p9  ;;  %s1530_s21 = sshll.u32 %s1418_s19, 5 }
  0x1a   : > { %s1006_s27 = sshll.u32 %s1310_s24, 5  ;;  %s1534_s0 = sld [smem:[#allocation15_spill]] }
  0x1b   : > { %s237_s9 = scalar_lea.vmem [#allocation2], %s1530_s21  ;;  %p1430_p0 = pnand %p1068_p12, %p40_p13 }
  0x1c   : > { %s245_s10 = sshll.u32 %s237_s9, 4  ;;  %s264_s24 = scalar_lea.hbm %s1528_s5, %s1006_s27  ;;  %s246_s10 = int_to_ptr.vmem [resolvable:$true] %s245_s10 }
  0x1d   : > { %s265_s17 = sshll.u32 %s264_s24, 4  ;;  %s234_s18 = scalar_lea.sflag [#allocation3], %s1418_s19  ;;  %s266_s17 = int_to_ptr.hbm [resolvable:$true] %s265_s17 }
  0x1e   : > { %p1180_p3 = pneg %p1430_p0 }
  0x20   : > { %s242_s7 = scalar_lea.hbm %s1534_s0, %s1006_s27  ;;  %s1183_s21 = scalar_lea.hbm %s1534_s0, 64 }
  0x21   : > { %s243_s8 = sshll.u32 %s242_s7, 4  ;;  %s244_s8 = int_to_ptr.hbm [resolvable:$true] %s243_s8 }
  0x22   : > { %s1176_s28 = sshra.s32 %s244_s8, 4  ;;  %s1177_s28 = int_to_ptr.hbm [resolvable:$true] %s1176_s28 }
  0x23   : > { %s1178_s29 = scalar_lea.hbm %s1177_s28, 32  ;;  %p1184_p9 = scmp.lt.s32.totalorder %s1177_s28, %s1534_s0 }
  0x24   : > { %p1179_p2 = scmp.ne.s32.totalorder %s1177_s28, %s1178_s29  ;;  %p1185_p10 = scmp.lt.s32.totalorder %s1183_s21, %s1178_s29 }
  0x26   : > { %p1181_p7 = pnand %p1180_p3, %p1179_p2  ;;  %p1186_p11 = por %p1185_p10, %p1184_p9 }
  0x28   : > { %p1182_p8 = pneg %p1181_p7 }
  0x2a   : > { %p1187_p12 = pnand %p1186_p11, %p1182_p8 }
  0x2c   : > { %1190 = shalt.err (!%p1187_p12)
}
  0x2d   : > { %1062 = dma.hbm_to_vmem [thread:$0]  (!%p1430_p0), %s244_s8, 512, %s246_s10, %s234_s18, %s1313_s12, %s1313_s12, %s1314_s13  }
  0x2e   : > { %s1536_s27 = sshll.u32 %s1418_s19, 5  ;;  %s256_s9 = scalar_lea.sflag [#allocation9], %s1418_s19 }
  0x2f   : > { %s259_s24 = scalar_lea.vmem [#allocation8], %s1536_s27  ;;  %s1206_s28 = sshra.s32 %s266_s17, 4  ;;  %s1207_s28 = int_to_ptr.hbm [resolvable:$true] %s1206_s28 }
  0x30   : > { %s267_s7 = sshll.u32 %s259_s24, 4  ;;  %s1208_s21 = scalar_lea.hbm %s1207_s28, 32  ;;  %s268_s7 = int_to_ptr.vmem [resolvable:$true] %s267_s7 }
  0x31   : > { %p1209_p13 = scmp.ne.s32.totalorder %s1207_s28, %s1208_s21  ;;  %s1213_s15 = scalar_lea.hbm %s1528_s5, 64 }
  0x32   : > { %p1214_p8 = scmp.lt.s32.totalorder %s1207_s28, %s1528_s5  ;;  %p1215_p9 = scmp.lt.s32.totalorder %s1213_s15, %s1208_s21 }
  0x33   : > { %p1211_p2 = pnand %p1209_p13, %p1180_p3 }
  0x34   : > { %p1216_p10 = por %p1215_p9, %p1214_p8 }
  0x35   : > { %p1212_p7 = pneg %p1211_p2 }
  0x37   : > { %p1217_p11 = pnand %p1216_p10, %p1212_p7 }
  0x39   : > { %1220 = shalt.err (!%p1217_p11)
}
  0x3a   : > { %1065 = dma.hbm_to_vmem [thread:$0]  (!%p1430_p0), %s266_s17, 512, %s268_s7, %s256_s9, %s1313_s12, %s1313_s12, %s1314_s13  }
  0x3b   : > { %279 = sbr.rel (%p1390_p6) target bundleno = 676 (0x2a4), region = 44  ;;  %s281_s19 = sand.u32 (!%p1390_p6), 1, %s1302_s22  }
  0x3c   : > { %s893_s10 = sshll.u32 (!%p1390_p6), %s281_s19, 5  ;;  %s282_s18 = scalar_lea.sflag (!%p1390_p6), [#allocation3], %s281_s19 }
  0x3d   : > { %s1474_s0 = scalar_lea.vmem (!%p1390_p6), [#allocation2], %s893_s10 }
  0x40   : > { %1281 = dma.done.wait (%p1383_p5), %s282_s18, 512  }
  0x41   : > { %1283 = vsyncadd (%p1383_p5), %s282_s18, 4294966784 }
  0x42   : > { %1285 = dma.done.wait (%p45_p1), [#allocation6], 2048  }
  0x43   : > { %1287 = vsyncadd (%p45_p1), [#allocation6], 4294965248  ;;  %s302_s30 = scalar_lea.sflag [#allocation9], %s281_s19  ;;  %s1484_s12 = scalar_lea.vmem [#allocation8], %s893_s10 }
  0x44   : > { %1289 = dma.done.wait (%p1383_p5), %s302_s30, 512  }
  0x45   : > { %1291 = vsyncadd (%p1383_p5), %s302_s30, 4294966784  ;;  %341 = sbr.rel (%p883_p4) target bundleno = 91 (0x5b), region = 64 }
  0x4a   : > { %v1316_v0 = vmov 0.0  }
  0x4b   : > { %342 = vst [vmem:[#allocation10] sm:$0xff] %v1316_v0 }
  0x4c   : > { %343 = vst [vmem:[#allocation10 + $0x8] sm:$0xff] %v1316_v0 }
  0x4d   : > { %344 = vst [vmem:[#allocation10 + $0x10] sm:$0xff] %v1316_v0 }
  0x4e   : > { %345 = vst [vmem:[#allocation10 + $0x18] sm:$0xff] %v1316_v0 }
  0x4f   : > { %346 = vst [vmem:[#allocation10 + $0x20] sm:$0xff] %v1316_v0 }
  0x50   : > { %347 = vst [vmem:[#allocation10 + $0x28] sm:$0xff] %v1316_v0 }
  0x51   : > { %348 = vst [vmem:[#allocation10 + $0x30] sm:$0xff] %v1316_v0 }
  0x52   : > { %349 = vst [vmem:[#allocation10 + $0x38] sm:$0xff] %v1316_v0 }
  0x53   : > { %350 = vst [vmem:[#allocation10 + $0x40] sm:$0xff] %v1316_v0 }
  0x54   : > { %351 = vst [vmem:[#allocation10 + $0x48] sm:$0xff] %v1316_v0 }
  0x55   : > { %352 = vst [vmem:[#allocation10 + $0x50] sm:$0xff] %v1316_v0 }
  0x56   : > { %353 = vst [vmem:[#allocation10 + $0x58] sm:$0xff] %v1316_v0 }
  0x57   : > { %354 = vst [vmem:[#allocation10 + $0x60] sm:$0xff] %v1316_v0 }
  0x58   : > { %355 = vst [vmem:[#allocation10 + $0x68] sm:$0xff] %v1316_v0 }
  0x59   : > { %356 = vst [vmem:[#allocation10 + $0x70] sm:$0xff] %v1316_v0 }
  0x5a   : > { %357 = vst [vmem:[#allocation10 + $0x78] sm:$0xff] %v1316_v0 }
  0x5b PF: > { %v1019_v1 = vld [vmem:[#allocation5 + $0x38] sm:$0xff]  ;;  %v1018_v2 = vld [vmem:[#allocation5 + $0x30] sm:$0xff]  ;;  %v1017_v3 = vld [vmem:[#allocation5 + $0x28] sm:$0xff]  ;;  %vm672_vm0 = vcmask 523264   ;;  %s1317_s27 = smov [#allocation10]   ;;  %s785_s28 = sshll.u32 %s1529_s6, 4  ;;  %s786_s28 = int_to_ptr.hbm [resolvable:$true] %s785_s28 }
  0x5c   : > { %458 = vmatpush.bf16.msra.mxu0 %v1019_v1  ;;  %v1016_v4 = vld [vmem:[#allocation5 + $0x20] sm:$0xff]  ;;  %v1015_v5 = vld [vmem:[#allocation5 + $0x18] sm:$0xff]  ;;  %v1014_v6 = vld [vmem:[#allocation5 + $0x10] sm:$0xff]  ;;  %s783_s24 = sshll.u32 %s1317_s27, 4  ;;  %p1071_p1 = scmp.eq.s32.totalorder %s1374_s25, 1  ;;  %s784_s24 = int_to_ptr.vmem [resolvable:$true] %s783_s24 }
  0x5d   : > { %v1013_v7 = vld [vmem:[#allocation5 + $0x8] sm:$0xff]  ;;  %v1012_v8 = vld [vmem:[#allocation5] sm:$0xff]  ;;  %v1027_v11 = vld [vmem:[#allocation7 + $0x38] sm:$0xff]  ;;  %s1318_s21 = smov 128   ;;  %s1319_s29 = smov 8  }
  0x5e   : > { %v1008_v9 = vld [vmem:[%s1474_s0] sm:$0xff]  ;;  %v1009_v10 = vld [vmem:[%s1474_s0 + $0x8] sm:$0xff]  ;;  %567 = vmatpush.bf16.msra.mxu1 %v1027_v11  ;;  %v1026_v13 = vld [vmem:[#allocation7 + $0x30] sm:$0xff] }
  0x5f   : > { %v1028_v12 = vld [vmem:[%s1484_s12] sm:$0xff]  ;;  %v1025_v14 = vld [vmem:[#allocation7 + $0x28] sm:$0xff]  ;;  %v1010_v16 = vld [vmem:[%s1474_s0 + $0x10] sm:$0xff] }
  0x60   : > { %459 = vmatpush.bf16.msra.mxu0 %v1018_v2  ;;  %656 = vxpose.xlu0.c.b16.start [1/4] (short) %v1028_v12, 128  ;;  %v1024_v15 = vld [vmem:[#allocation7 + $0x20] sm:$0xff]  ;;  %v1011_v17 = vld [vmem:[%s1474_s0 + $0x18] sm:$0xff]  ;;  %v1022_v19 = vld [vmem:[#allocation7 + $0x10] sm:$0xff] }
  0x61   : > { %v1023_v18 = vld [vmem:[#allocation7 + $0x18] sm:$0xff]  ;;  %v1029_v20 = vld [vmem:[%s1484_s12 + $0x8] sm:$0xff]  ;;  %v1020_v22 = vld [vmem:[#allocation7] sm:$0xff] }
  0x62   : > { %568 = vmatpush.bf16.msra.mxu1 %v1026_v13  ;;  %v1021_v21 = vld [vmem:[#allocation7 + $0x8] sm:$0xff]  ;;  %v1030_v23 = vld [vmem:[%s1484_s12 + $0x10] sm:$0xff]  ;;  %v1114_v25 = vld [vmem:[%s1525_s2] ss:$0 sm:$0xff] }
  0x63   : > { %v1031_v26 = vld [vmem:[%s1484_s12 + $0x18] sm:$0xff]  ;;  %v1115_v0 = vld [vmem:[%s1527_s4] ss:$0 sm:$0xff] }
  0x64   : > { %460 = vmatpush.bf16.msra.mxu0 %v1017_v3 }
  0x66   : > { %569 = vmatpush.bf16.msra.mxu1 %v1025_v14 }
  0x68   : > { %461 = vmatpush.bf16.msra.mxu0 %v1016_v4 }
  0x6a   : > { %570 = vmatpush.bf16.msra.mxu1 %v1024_v15 }
  0x6c   : > { %462 = vmatpush.bf16.msra.mxu0 %v1015_v5 }
  0x6e   : > { %571 = vmatpush.bf16.msra.mxu1 %v1023_v18 }
  0x70   : > { %463 = vmatpush.bf16.msra.mxu0 %v1014_v6  ;;  %657 = vxpose.xlu0.c.b16.cont [2/4] (short) %v1029_v20, 128 }
  0x72   : > { %572 = vmatpush.bf16.msra.mxu1 %v1022_v19 }
  0x74   : > { %464 = vmatpush.bf16.msra.mxu0 %v1013_v7 }
  0x76   : > { %573 = vmatpush.bf16.msra.mxu1 %v1021_v21 }
  0x78   : > { %465 = vmatpush.bf16.msra.mxu0 %v1012_v8 }
  0x7a   : > { %574 = vmatpush.bf16.msra.mxu1 %v1020_v22 }
  0x7b   : > { %466 = vmatmul.bf16.vlgmr.msra.gmra.mxu0 %v1008_v9 }
  0x80   : > { %658 = vxpose.xlu0.c.b16.cont [3/4] (short) %v1030_v23, 128 }
  0x8b   : > { %471 = vmatmul.bf16.gmra.mxu0 %v1009_v10 }
  0x90   : > { %659 = vxpose.xlu0.c.b16.end [4/4] (short) %v1031_v26, 128 }
  0x9b   : > { %476 = vmatmul.bf16.gmra.mxu0 %v1010_v16 }
  0xab   : > { %481 = vmatmul.bf16.gmra.mxu0 %v1011_v17 }
  0xf8   : > { %v467_v24 = vpop.f32.mrf.mxu0 }
  0xf9   : > { %v468_v27 = vadd.f32 %v1114_v25, %v467_v24 }
  0xfb   : > { %v487_v30 = vmax.f32 %v468_v27, 0.0  ;;  %v604_v27 = vld [vmem:[#allocation10] sm:$0xff] }
 0x100   : > { %v469_v28 = vpop.f32.mrf.mxu0 }
 0x101   : > { %v470_v29 = vadd.f32 %v1114_v25, %v469_v28  ;;  %v614_v28 = vld [vmem:[#allocation10 + $0x50] sm:$0xff] }
 0x103   : > { %v488_v31 = vmax.f32 %v470_v29, 0.0 }
 0x105   : > { %v495_v32 = vpack.c.bf16 %v488_v31, %v487_v30 }
 0x107   : > { %575 = vmatmul.bf16.vlgmr.msra.gmra.mxu1 %v495_v32 }
 0x108   : > { %v472_v33 = vpop.f32.mrf.mxu0 }
 0x109   : > { %v473_v34 = vadd.f32 %v1114_v25, %v472_v33  ;;  %v605_v33 = vld [vmem:[#allocation10 + $0x8] sm:$0xff] }
 0x10b   : > { %v489_v37 = vmax.f32 %v473_v34, 0.0  ;;  %v615_v34 = vld [vmem:[#allocation10 + $0x58] sm:$0xff] }
 0x10c   : > { %v664_v58 = vpop.trf.xlu0 }
 0x110   : > { %v474_v35 = vpop.f32.mrf.mxu0 }
 0x111   : > { %v475_v36 = vadd.f32 %v1114_v25, %v474_v35 }
 0x113   : > { %v490_v38 = vmax.f32 %v475_v36, 0.0 }
 0x115   : > { %v496_v39 = vpack.c.bf16 %v490_v38, %v489_v37 }
 0x117   : > { %580 = vmatmul.bf16.gmra.mxu1 %v496_v39  ;;  %v606_v39 = vld [vmem:[#allocation10 + $0x10] sm:$0xff] }
 0x118   : > { %v477_v40 = vpop.f32.mrf.mxu0 }
 0x119   : > { %v478_v41 = vadd.f32 %v1114_v25, %v477_v40  ;;  %v616_v40 = vld [vmem:[#allocation10 + $0x60] sm:$0xff] }
 0x11b   : > { %v491_v44 = vmax.f32 %v478_v41, 0.0 }
 0x11c   : > { %v665_v60 = vpop.trf.xlu0 }
 0x120   : > { %v479_v42 = vpop.f32.mrf.mxu0 }
 0x121   : > { %v480_v43 = vadd.f32 %v1114_v25, %v479_v42 }
 0x123   : > { %v492_v45 = vmax.f32 %v480_v43, 0.0 }
 0x125   : > { %v497_v46 = vpack.c.bf16 %v492_v45, %v491_v44  ;;  %v607_v45 = vld [vmem:[#allocation10 + $0x18] sm:$0xff] }
 0x127   : > { %585 = vmatmul.bf16.gmra.mxu1 %v497_v46  ;;  %v617_v46 = vld [vmem:[#allocation10 + $0x68] sm:$0xff] }
 0x128   : > { %v482_v47 = vpop.f32.mrf.mxu0 }
 0x129   : > { %v483_v48 = vadd.f32 %v1114_v25, %v482_v47 }
 0x12b   : > { %v493_v51 = vmax.f32 %v483_v48, 0.0 }
 0x12c   : > { %v666_v62 = vpop.trf.xlu0 }
 0x130   : > { %v484_v49 = vpop.f32.mrf.mxu0 }
 0x131   : > { %v485_v50 = vadd.f32 %v1114_v25, %v484_v49 }
 0x133   : > { %v494_v52 = vmax.f32 %v485_v50, 0.0 }
 0x135   : > { %v498_v53 = vpack.c.bf16 %v494_v52, %v493_v51  ;;  %v608_v51 = vld [vmem:[#allocation10 + $0x20] sm:$0xff]  ;;  %v618_v52 = vld [vmem:[#allocation10 + $0x70] sm:$0xff] }
 0x137   : > { %590 = vmatmul.bf16.gmra.mxu1 %v498_v53 }
 0x13c   : > { %v667_v2 = vpop.trf.xlu0 }
 0x14c   : > { %v668_v17 = vpop.trf.xlu0 }
 0x15c   : > { %v669_v24 = vpop.trf.xlu0 }
 0x16c   : > { %v670_v25 = vpop.trf.xlu0 }
 0x17c   : > { %v671_v26 = vpop.trf.xlu0 }
 0x184   : > { %v576_v54 = vpop.f32.mrf.mxu1 }
 0x185   : > { %v577_v18 = vadd.f32 %v1115_v0, %v576_v54 }
 0x187   : > { %v596_v22 = vmax.f32 %v577_v18, 0.0 }
 0x18c   : > { %v578_v55 = vpop.f32.mrf.mxu1 }
 0x18d   : > { %v579_v14 = vadd.f32 %v1115_v0, %v578_v55 }
 0x18f   : > { %v597_v20 = vmax.f32 %v579_v14, 0.0 }
 0x191   : > { %v628_v23 = vpack.c.bf16 %v597_v20, %v596_v22 }
 0x194   : > { %v581_v56 = vpop.f32.mrf.mxu1 }
 0x195   : > { %v582_v12 = vadd.f32 %v1115_v0, %v581_v56 }
 0x197   : > { %v598_v19 = vmax.f32 %v582_v12, 0.0 }
 0x19c   : > { %v583_v57 = vpop.f32.mrf.mxu1 }
 0x19d   : > { %v584_v9 = vadd.f32 %v1115_v0, %v583_v57  ;;  %v609_v57 = vld [vmem:[#allocation10 + $0x28] sm:$0xff] }
 0x19f   : > { %v599_v15 = vmax.f32 %v584_v9, 0.0 }
 0x1a1   : > { %v629_v21 = vpack.c.bf16 %v599_v15, %v598_v19 }
 0x1a4   : > { %v586_v59 = vpop.f32.mrf.mxu1 }
 0x1a5   : > { %v587_v6 = vadd.f32 %v1115_v0, %v586_v59 }
 0x1a7   : > { %v600_v13 = vmax.f32 %v587_v6, 0.0 }
 0x1ac   : > { %v588_v61 = vpop.f32.mrf.mxu1 }
 0x1ad   : > { %v589_v4 = vadd.f32 %v1115_v0, %v588_v61 }
 0x1af   : > { %v601_v10 = vmax.f32 %v589_v4, 0.0 }
 0x1b1   : > { %v630_v16 = vpack.c.bf16 %v601_v10, %v600_v13 }
 0x1b4   : > { %v591_v63 = vpop.f32.mrf.mxu1 }
 0x1b5   : > { %v592_v1 = vadd.f32 %v1115_v0, %v591_v63  ;;  %v610_v63 = vld [vmem:[#allocation10 + $0x30] sm:$0xff] }
 0x1b7   : > { %v602_v7 = vmax.f32 %v592_v1, 0.0 }
 0x1bc   : > { %v593_v3 = vpop.f32.mrf.mxu1 }
 0x1bd   : > { %v594_v5 = vadd.f32 %v1115_v0, %v593_v3 }
 0x1bf   : > { %v603_v8 = vmax.f32 %v594_v5, 0.0  ;;  %v612_v5 = vld [vmem:[#allocation10 + $0x40] sm:$0xff] }
 0x1c1   : > { %v631_v11 = vpack.c.bf16 %v603_v8, %v602_v7  ;;  %v613_v8 = vld [vmem:[#allocation10 + $0x48] sm:$0xff] }
 0x1c3   : > { %701 = vmatpush.bf16.msra.mxu2 %v631_v11  ;;  %1032 = vmatpush.bf16.msra.mxu3 %v631_v11 }
 0x1c7   : > { %702 = vmatpush.bf16.msra.mxu2 %v630_v16  ;;  %1033 = vmatpush.bf16.msra.mxu3 %v630_v16 }
 0x1cb   : > { %703 = vmatpush.bf16.msra.mxu2 %v629_v21  ;;  %1034 = vmatpush.bf16.msra.mxu3 %v629_v21 }
 0x1cf   : > { %704 = vmatpush.bf16.msra.mxu2 %v628_v23  ;;  %1035 = vmatpush.bf16.msra.mxu3 %v628_v23 }
 0x1d2   : > { %994 = vmatmul.msk.bf16.vlgmr.msra.gmra.mxu2 %vm672_vm0, %v664_v58  ;;  %999 = vmatmul.msk.bf16.vlgmr.msra.gmra.mxu3 %vm672_vm0, %v669_v24  ;;  %v619_v58 = vld [vmem:[#allocation10 + $0x78] sm:$0xff] }
 0x1e2   : > { %995 = vmatmul.msk.bf16.gmra.mxu2 %vm672_vm0, %v665_v60  ;;  %1000 = vmatmul.msk.bf16.gmra.mxu3 %vm672_vm0, %v670_v25 }
 0x1f2   : > { %996 = vmatmul.msk.bf16.gmra.mxu2 %vm672_vm0, %v666_v62  ;;  %1001 = vmatmul.msk.bf16.gmra.mxu3 %vm672_vm0, %v671_v26 }
 0x202   : > { %997 = vmatmul.msk.bf16.gmra.mxu2 %vm672_vm0, %v667_v2  ;;  %v611_v2 = vld [vmem:[#allocation10 + $0x38] sm:$0xff] }
 0x212   : > { %998 = vmatmul.msk.bf16.gmra.mxu2 %vm672_vm0, %v668_v17 }
 0x255   : > { %v706_v29 = vpop.f32.mrf.mxu2  ;;  %v731_v30 = vpop.f32.mrf.mxu3 }
 0x256   : > { %v746_v31 = vadd.f32 %v706_v29, %v604_v27  ;;  %v756_v32 = vadd.f32 %v731_v30, %v614_v28 }
 0x258   : > { %762 = vst [vmem:[#allocation10] sm:$0xff] %v746_v31 }
 0x259   : > { %772 = vst [vmem:[#allocation10 + $0x50] sm:$0xff] %v756_v32 }
 0x25d   : > { %v708_v35 = vpop.f32.mrf.mxu2  ;;  %v733_v36 = vpop.f32.mrf.mxu3 }
 0x25e   : > { %v747_v37 = vadd.f32 %v708_v35, %v605_v33  ;;  %v757_v38 = vadd.f32 %v733_v36, %v615_v34 }
 0x260   : > { %763 = vst [vmem:[#allocation10 + $0x8] sm:$0xff] %v747_v37 }
 0x261   : > { %773 = vst [vmem:[#allocation10 + $0x58] sm:$0xff] %v757_v38 }
 0x265   : > { %v711_v41 = vpop.f32.mrf.mxu2  ;;  %v736_v42 = vpop.f32.mrf.mxu3 }
 0x266   : > { %v748_v43 = vadd.f32 %v711_v41, %v606_v39  ;;  %v758_v44 = vadd.f32 %v736_v42, %v616_v40 }
 0x268   : > { %764 = vst [vmem:[#allocation10 + $0x10] sm:$0xff] %v748_v43 }
 0x269   : > { %774 = vst [vmem:[#allocation10 + $0x60] sm:$0xff] %v758_v44 }
 0x26d   : > { %v713_v47 = vpop.f32.mrf.mxu2  ;;  %v738_v48 = vpop.f32.mrf.mxu3 }
 0x26e   : > { %v749_v49 = vadd.f32 %v713_v47, %v607_v45  ;;  %v759_v50 = vadd.f32 %v738_v48, %v617_v46 }
 0x270   : > { %765 = vst [vmem:[#allocation10 + $0x18] sm:$0xff] %v749_v49 }
 0x271   : > { %775 = vst [vmem:[#allocation10 + $0x68] sm:$0xff] %v759_v50 }
 0x275   : > { %v716_v53 = vpop.f32.mrf.mxu2  ;;  %v741_v54 = vpop.f32.mrf.mxu3 }
 0x276   : > { %v750_v55 = vadd.f32 %v716_v53, %v608_v51  ;;  %v760_v56 = vadd.f32 %v741_v54, %v618_v52 }
 0x278   : > { %766 = vst [vmem:[#allocation10 + $0x20] sm:$0xff] %v750_v55 }
 0x279   : > { %776 = vst [vmem:[#allocation10 + $0x70] sm:$0xff] %v760_v56 }
 0x27d   : > { %v718_v59 = vpop.f32.mrf.mxu2  ;;  %v743_v60 = vpop.f32.mrf.mxu3 }
 0x27e   : > { %v751_v61 = vadd.f32 %v718_v59, %v609_v57  ;;  %v761_v62 = vadd.f32 %v743_v60, %v619_v58 }
 0x280   : > { %767 = vst [vmem:[#allocation10 + $0x28] sm:$0xff] %v751_v61 }
 0x281   : > { %777 = vst [vmem:[#allocation10 + $0x78] sm:$0xff] %v761_v62 }
 0x285   : > { %v721_v0 = vpop.f32.mrf.mxu2 }
 0x286   : > { %v752_v1 = vadd.f32 %v721_v0, %v610_v63 }
 0x288   : > { %768 = vst [vmem:[#allocation10 + $0x30] sm:$0xff] %v752_v1 }
 0x28d   : > { %v723_v3 = vpop.f32.mrf.mxu2 }
 0x28e   : > { %v753_v4 = vadd.f32 %v723_v3, %v611_v2 }
 0x290   : > { %769 = vst [vmem:[#allocation10 + $0x38] sm:$0xff] %v753_v4 }
 0x295   : > { %v726_v6 = vpop.f32.mrf.mxu2 }
 0x296   : > { %v754_v7 = vadd.f32 %v726_v6, %v612_v5 }
 0x298   : > { %770 = vst [vmem:[#allocation10 + $0x40] sm:$0xff] %v754_v7 }
 0x29d   : > { %v728_v9 = vpop.f32.mrf.mxu2 }
 0x29e   : > { %v755_v10 = vadd.f32 %v728_v9, %v613_v8 }
 0x2a0   : > { %771 = vst [vmem:[#allocation10 + $0x48] sm:$0xff] %v755_v10 }
 0x2a1   : > { %1049 = dma.vmem_to_hbm [thread:$0]  (%p1071_p1), %s784_s24, 2048, %s786_s28, [#allocation4], %s1318_s21, %s1318_s21, %s1319_s29  }
 0x2a2   : > { %1293 = dma.done.wait (%p1071_p1), [#allocation4], 2048  }
 0x2a3   : > { %1295 = vsyncadd (%p1071_p1), [#allocation4], 4294965248 }
 0x2a4 PF: > { %p21_p4 = scmp.ge.s32.totalorder %s1408_s16, 4   ;;  %s1537_s21 = smov %s1302_s22 }
 0x2a5   : > { %s1538_s22 = smov %s1306_s23  ;;  %s1539_s23 = smov %s1421_s20 }
 0x2a6   : > { %s1540_s24 = smov %s1408_s16  ;;  %23 = sbr.rel (!%p21_p4) target bundleno = 9 (0x9), region = 106 }
 0x2ab   :  { %802 = vsyncpa [#allocation3], 1 }
 0x2ac   :  { %804 = vsyncpa [#allocation3 + $0x1], 1 }
 0x2ad   :  { %805 = vsyncpa [#allocation6], 1 }
 0x2ae   :  { %806 = vsyncpa [#allocation9], 1 }
 0x2af   :  { %808 = vsyncpa [#allocation9 + $0x1], 1 }
 0x2b0   :  { %809 = vsyncpa [#allocation4], 1 }
 0x2b1   :  { %811 = vsyncpa [#allocation4 + $0x1], 1 }

</bundles_post_ra>
